<compile_context>
chip_gen: v7x
topology: tpu7x:2x2x1
jax: 0.10.0
libtpu: 0.0.40
codegen_flags: <defaults>
</compile_context>

<pallas_src>
import functools

import jax
import jax.numpy as jnp
from jax.experimental import pallas as pl
from jax.experimental.pallas import tpu as pltpu


_LANE_BLOCK_CAP = 2048               # keep per-column stat rows vreg-resident (v7x)
_FALLBACK_VMEM = 64 * 1024 * 1024    # assume v7x-sized VMEM if the query fails


def _vmem_budgets():
    """Generation-aware VMEM sizing.

    budget: bytes for double-buffered in+out pipeline tiles plus in-kernel f32
            scratch (~3/8 of physical VMEM -> 24 MiB on v7x, 48 MiB on v5e/v6e).
    limit:  scoped vmem_limit_bytes (~3/4 of physical VMEM -> 48 MiB on v7x,
            96 MiB on v5e/v6e).  Keeping an explicit limit matters most on v5e,
            whose scoped default is only 16 MiB.
    """
    vmem = 0
    try:
        info = pltpu.get_tpu_info()
        vmem = int(getattr(info, "vmem_capacity_bytes", 0) or 0)
    except Exception:  # CPU tracing / older jax -> conservative fallback
        vmem = 0
    if vmem <= 0:
        vmem = _FALLBACK_VMEM
    return (vmem * 3) // 8, (vmem * 3) // 4


# ---------------------------------------------------------------------------
# Single-pass path: full T per block, lane-tiled instances (optimal 1R + 1W).
# ---------------------------------------------------------------------------

def _adain_kernel(x_ref, wb_ref, o_ref, *, eps, inv_t):
    # x_ref / o_ref: (T, cb) -- one lane-block of instances, full time extent.
    # wb_ref:        (2, cb) -- row 0 = weight, row 1 = bias (f32).
    x = x_ref[...].astype(jnp.float32)

    # Single stats sweep: sum and sum-of-squares (sublane reduction on the XLU).
    s1 = jnp.sum(x, axis=0, keepdims=True)               # (1, cb)
    s2 = jnp.sum(x * x, axis=0, keepdims=True)           # (1, cb)
    mean = s1 * inv_t
    var = jnp.maximum(s2 * inv_t - mean * mean, 0.0)     # biased var, cancellation guard
    inv = jax.lax.rsqrt(var + eps)                       # EUP slot (~free)

    wb = wb_ref[...]
    scale = inv * wb[0:1, :]                             # fold affine into scale/shift
    shift = wb[1:2, :] - mean * scale
    o_ref[...] = (x * scale + shift).astype(o_ref.dtype)


def _per_col_bytes(T, itemsize):
    # 2x input + 2x output pipeline buffers, plus in-kernel f32 upcast / x*x scratch.
    return 4 * T * itemsize + 2 * T * 4


def _choose_lane_block(T, BC, itemsize, budget):
    """Lane-block width: multiple of 128, <= _LANE_BLOCK_CAP (vreg-resident stat
    rows), double-buffered tiles + f32 scratch within `budget`, preferring an
    even number (>= 2) of grid steps for a balanced v7x megacore split."""
    per_col = _per_col_bytes(T, itemsize)
    max_cb = (budget // per_col) // 128 * 128
    max_cb = int(max(128, min(max_cb, _LANE_BLOCK_CAP)))
    n128 = pl.cdiv(BC, 128)

    if n128 * 128 <= max_cb:
        # Whole slab fits one block: still split ~in half so the second v7x core
        # has work and the input/compute/output phases pipeline.
        if n128 >= 2:
            return ((n128 + 1) // 2) * 128
        return 128

    # Largest cb <= max_cb whose step count is even; accept at most ~25% shrink.
    cand = max_cb
    floor = max(128, (max_cb * 3) // 4)
    while cand >= floor:
        if pl.cdiv(BC, cand) % 2 == 0:
            return cand
        cand -= 128
    return max_cb


def _single_pass(xr, wb, T, BC, itemsize, eps, budget, vmem_limit):
    if BC <= 128:
        cb = BC                       # full-extent lane block (legal at any width)
    else:
        cb = _choose_lane_block(T, BC, itemsize, budget)
    grid = (pl.cdiv(BC, cb),)

    return pl.pallas_call(
        functools.partial(_adain_kernel, eps=float(eps), inv_t=1.0 / T),
        out_shape=jax.ShapeDtypeStruct((T, BC), xr.dtype),
        grid=grid,
        in_specs=[
            pl.BlockSpec((T, cb), lambda i: (0, i)),
            pl.BlockSpec((2, cb), lambda i: (0, i)),
        ],
        out_specs=pl.BlockSpec((T, cb), lambda i: (0, i)),
        compiler_params=pltpu.CompilerParams(
            dimension_semantics=("parallel",),
            vmem_limit_bytes=vmem_limit),
    )(xr, wb)


# ---------------------------------------------------------------------------
# Two-pass path for very long T: stats pass (lanes parallel x T arbitrary,
# accumulated into VMEM scratch) + fully parallel normalize pass (1.5x traffic).
# ---------------------------------------------------------------------------

def _stats_kernel(x_ref, wb_ref, ss_ref, acc_ref, *, eps, inv_t, t_total, t_block):
    k = pl.program_id(1)

    @pl.when(k == 0)
    def _init():
        acc_ref[...] = jnp.zeros_like(acc_ref)

    x = x_ref[...].astype(jnp.float32)                    # (tt, cb)
    if t_total % t_block:
        # Ragged final T block: zero rows past the end so they don't pollute sums.
        row = jax.lax.broadcasted_iota(jnp.int32, x.shape, 0) + k * t_block
        x = jnp.where(row < t_total, x, 0.0)

    acc_ref[0:1, :] += jnp.sum(x, axis=0, keepdims=True)
    acc_ref[1:2, :] += jnp.sum(x * x, axis=0, keepdims=True)

    @pl.when(k == pl.num_programs(1) - 1)
    def _finalize():
        mean = acc_ref[0:1, :] * inv_t
        var = jnp.maximum(acc_ref[1:2, :] * inv_t - mean * mean, 0.0)
        inv = jax.lax.rsqrt(var + eps)
        wb = wb_ref[...]
        scale = inv * wb[0:1, :]
        ss_ref[0:1, :] = scale
        ss_ref[1:2, :] = wb[1:2, :] - mean * scale


def _apply_kernel(x_ref, ss_ref, o_ref):
    ss = ss_ref[...]
    x = x_ref[...].astype(jnp.float32)
    o_ref[...] = (x * ss[0:1, :] + ss[1:2, :]).astype(o_ref.dtype)


def _two_pass(xr, wb, T, BC, itemsize, eps, budget, vmem_limit):
    n128 = pl.cdiv(BC, 128)
    if BC < 128:
        cb = BC
    else:
        cb = min(max(512, 128), _LANE_BLOCK_CAP, n128 * 128)
        cb = max(128, (cb // 128) * 128)

    per_elem = 4 * itemsize + 2 * 4              # in/out double-buffers + f32 scratch
    tt = budget // (per_elem * cb)
    tt = max(8, min((tt // 8) * 8, T))

    n_lane = pl.cdiv(BC, cb)
    n_t = pl.cdiv(T, tt)
    grid = (n_lane, n_t)

    scale_shift = pl.pallas_call(
        functools.partial(_stats_kernel, eps=float(eps), inv_t=1.0 / T,
                          t_total=T, t_block=tt),
        out_shape=jax.ShapeDtypeStruct((2, BC), jnp.float32),
        grid=grid,
        in_specs=[
            pl.BlockSpec((tt, cb), lambda i, k: (k, i)),
            pl.BlockSpec((2, cb), lambda i, k: (0, i)),
        ],
        out_specs=pl.BlockSpec((2, cb), lambda i, k: (0, i)),
        scratch_shapes=[pltpu.VMEM((2, cb), jnp.float32)],
        compiler_params=pltpu.CompilerParams(
            dimension_semantics=("parallel", "arbitrary"),
            vmem_limit_bytes=vmem_limit),
    )(xr, wb)

    return pl.pallas_call(
        _apply_kernel,
        out_shape=jax.ShapeDtypeStruct((T, BC), xr.dtype),
        grid=grid,
        in_specs=[
            pl.BlockSpec((tt, cb), lambda i, k: (k, i)),
            pl.BlockSpec((2, cb), lambda i, k: (0, i)),
        ],
        out_specs=pl.BlockSpec((tt, cb), lambda i, k: (k, i)),
        compiler_params=pltpu.CompilerParams(
            dimension_semantics=("parallel", "parallel"),
            vmem_limit_bytes=vmem_limit),
    )(xr, scale_shift)


# ---------------------------------------------------------------------------
# Public wrapper
# ---------------------------------------------------------------------------

def adaptive_instance_norm_1d(x, weight, bias, eps=1e-5, *, pipe_budget=None):
    """AdaIN forward (direct_weighting=False).

    x: (T, B, C) (seq, batch, features); weight, bias: (B*C,). Returns (T, B, C).
    pipe_budget (bytes) overrides the auto-detected VMEM pipeline budget
    (used by tests to force the long-T two-pass path)."""
    T, B, C = x.shape
    BC = B * C
    itemsize = jnp.dtype(x.dtype).itemsize

    budget, vmem_limit = _vmem_budgets()
    if pipe_budget is not None:
        budget = int(pipe_budget)

    xr = x.reshape(T, BC)                                        # free view, no transpose
    wb = jnp.stack([weight.reshape(-1), bias.reshape(-1)],
                   axis=0).astype(jnp.float32)                   # (2, BC)

    # Single-pass (1R + 1W) if even a minimum-width full-T lane block fits the
    # pipeline budget; otherwise T-tiled two-pass (1.5x traffic, still pipelined).
    if _per_col_bytes(T, itemsize) * min(BC, 128) <= budget:
        out = _single_pass(xr, wb, T, BC, itemsize, eps, budget, vmem_limit)
    else:
        out = _two_pass(xr, wb, T, BC, itemsize, eps, budget, vmem_limit)
    return out.reshape(T, B, C)


def _reference(x, weight, bias, eps=1e-5):
    # Pure-JAX mirror of the PyTorch permute -> F.batch_norm(training=True) path.
    T, B, C = x.shape
    xr = jnp.transpose(x, (1, 2, 0)).reshape(B * C, T).astype(jnp.float32)
    mean = jnp.mean(xr, axis=-1, keepdims=True)
    var = jnp.mean((xr - mean) ** 2, axis=-1, keepdims=True)
    y = (xr - mean) / jnp.sqrt(var + eps)
    y = y * weight.reshape(-1, 1).astype(jnp.float32) + bias.reshape(-1, 1).astype(jnp.float32)
    return jnp.transpose(y.reshape(B, C, T), (2, 0, 1)).astype(x.dtype)


if __name__ == "__main__":
    key = jax.random.PRNGKey(0)

    def _run_case(T, B, C, pipe_budget=None, atol=3e-5):
        kx, kw, kb = jax.random.split(jax.random.fold_in(key, T * 100003 + B * 101 + C), 3)
        x = jax.random.normal(kx, (T, B, C), dtype=jnp.float32)
        # weight/bias are assigned externally in the PyTorch module; shape (B*C,).
        weight = jax.random.normal(kw, (B * C,), dtype=jnp.float32) * 0.5 + 1.0
        bias = jax.random.normal(kb, (B * C,), dtype=jnp.float32) * 0.1

        out = jax.block_until_ready(
            adaptive_instance_norm_1d(x, weight, bias, pipe_budget=pipe_budget))
        ref = _reference(x, weight, bias)
        assert out.shape == (T, B, C)
        assert out.dtype == x.dtype
        err = float(jnp.max(jnp.abs(out - ref)))
        assert err <= atol, f"mismatch T={T} B={B} C={C}: max abs err {err}"

    # Small shape consistent with the module: seq T=8, batch B=2, num_features C=4.
    _run_case(T=8, B=2, C=4)
    # Lane-tiled, 2-step parallel grid (BC a multiple of 128).
    _run_case(T=128, B=4, C=64)
    # BC not a multiple of 128 -> unpadded ragged tail block (masked reads/writes).
    _run_case(T=96, B=3, C=100)
    # Long-T two-pass fallback, forced via a tiny pipeline budget (exercises the
    # stats/normalize pair and the ragged-T-block masking).
    _run_case(T=300, B=2, C=192, pipe_budget=1 << 19)

    print("KERNEL_OK")
</pallas_src>

<mosaic_0001>
module attributes {stable_mosaic.version = 11 : i64} {
  func.func @_adain_kernel(%arg0: i32, %arg1: memref<8x8xf32, #tpu.memory_space<vmem>>, %arg2: memref<2x8xf32, #tpu.memory_space<vmem>>, %arg3: memref<8x8xf32, #tpu.memory_space<vmem>>) attributes {dimension_semantics = [#tpu.dimension_semantics<parallel>], iteration_bounds = array<i64: 1>, scalar_prefetch = 0 : i64, scratch_operands = 0 : i64, tpu.core_type = #tpu.core_type<tc>, window_params = [{transform_indices = @transform_0, window_bounds = array<i64: 8, 8>}, {transform_indices = @transform_1, window_bounds = array<i64: 2, 8>}, {transform_indices = @transform_2, window_bounds = array<i64: 8, 8>}]} {
    %c0 = arith.constant 0 : index
    %c0_0 = arith.constant 0 : index
    %0 = vector.load %arg1[%c0, %c0_0] : memref<8x8xf32, #tpu.memory_space<vmem>>, vector<8x8xf32>
    %cst = arith.constant dense<0.000000e+00> : vector<8xf32>
    %1 = vector.multi_reduction <add>, %0, %cst [0] : vector<8x8xf32> to vector<8xf32>
    %2 = vector.shape_cast %1 : vector<8xf32> to vector<1x8xf32>
    %3 = arith.mulf %0, %0 : vector<8x8xf32>
    %cst_1 = arith.constant dense<0.000000e+00> : vector<8xf32>
    %4 = vector.multi_reduction <add>, %3, %cst_1 [0] : vector<8x8xf32> to vector<8xf32>
    %5 = vector.shape_cast %4 : vector<8xf32> to vector<1x8xf32>
    %cst_2 = arith.constant 1.250000e-01 : f32
    %6 = vector.broadcast %cst_2 : f32 to vector<1x8xf32>
    %7 = arith.mulf %2, %6 : vector<1x8xf32>
    %cst_3 = arith.constant 1.250000e-01 : f32
    %8 = vector.broadcast %cst_3 : f32 to vector<1x8xf32>
    %9 = arith.mulf %5, %8 : vector<1x8xf32>
    %10 = arith.mulf %7, %7 : vector<1x8xf32>
    %11 = arith.subf %9, %10 : vector<1x8xf32>
    %cst_4 = arith.constant 0.000000e+00 : f32
    %12 = vector.broadcast %cst_4 : f32 to vector<1x8xf32>
    %13 = arith.maximumf %11, %12 : vector<1x8xf32>
    %cst_5 = arith.constant 9.99999974E-6 : f32
    %14 = vector.broadcast %cst_5 : f32 to vector<1x8xf32>
    %15 = arith.addf %13, %14 : vector<1x8xf32>
    %16 = math.rsqrt %15 : vector<1x8xf32>
    %c0_6 = arith.constant 0 : index
    %c0_7 = arith.constant 0 : index
    %17 = vector.load %arg2[%c0_6, %c0_7] : memref<2x8xf32, #tpu.memory_space<vmem>>, vector<2x8xf32>
    %18 = vector.extract_strided_slice %17 {offsets = [0, 0], sizes = [1, 8], strides = [1, 1]} : vector<2x8xf32> to vector<1x8xf32>
    %19 = arith.mulf %16, %18 : vector<1x8xf32>
    %20 = vector.extract_strided_slice %17 {offsets = [1, 0], sizes = [1, 8], strides = [1, 1]} : vector<2x8xf32> to vector<1x8xf32>
    %21 = arith.mulf %7, %19 : vector<1x8xf32>
    %22 = arith.subf %20, %21 : vector<1x8xf32>
    %23 = vector.broadcast %19 : vector<1x8xf32> to vector<8x8xf32>
    %24 = arith.mulf %0, %23 : vector<8x8xf32>
    %25 = vector.broadcast %22 : vector<1x8xf32> to vector<8x8xf32>
    %26 = arith.addf %24, %25 : vector<8x8xf32>
    %c0_8 = arith.constant 0 : index
    %c0_9 = arith.constant 0 : index
    %27 = vector.load %arg3[%c0_8, %c0_9] : memref<8x8xf32, #tpu.memory_space<vmem>>, vector<8x8xf32>
    tpu.vector_store %arg3[%c0_8, %c0_9], %26 {strides = array<i32>} : memref<8x8xf32, #tpu.memory_space<vmem>>, vector<8x8xf32>,
    return
  }
  func.func @transform_0(%arg0: i32) -> (i32, i32) {
    %c0_i32 = arith.constant 0 : i32
    %c0_i32_0 = arith.constant 0 : i32
    return %c0_i32, %arg0 : i32, i32
  }
  func.func @transform_1(%arg0: i32) -> (i32, i32) {
    %c0_i32 = arith.constant 0 : i32
    %c0_i32_0 = arith.constant 0 : i32
    return %c0_i32, %arg0 : i32, i32
  }
  func.func @transform_2(%arg0: i32) -> (i32, i32) {
    %c0_i32 = arith.constant 0 : i32
    %c0_i32_0 = arith.constant 0 : i32
    return %c0_i32, %arg0 : i32, i32
  }
}

</mosaic_0001>

<bundles_post_ra>
// kernel: tpu_custom_call.1
= control target key start
LH: loop header
LB: loop body
LE: loop exit
PB: predicated region body
PF: predicated region fallthrough
CT: control target
= control target key end

     0   :  { %7 = vsyncpa [#allocation3], 0  ;;  %s180_s0 = inlined_call_operand.hbm [shape: f32[8,8], index: 0, kind: input, shape index: {}]   ;;  %s181_s1 = inlined_call_operand.vmem [shape: f32[2,8], index: 1, kind: input, shape index: {}]   ;;  %s182_s2 = inlined_call_operand.hbm [shape: f32[8,8], index: 2, kind: output, shape index: {}]  }
   0x1   :  { %8 = vsyncpa [#allocation4], 0  ;;  %s133_s9 = smov [#allocation2]   ;;  %s85_s13 = scalar_lea.hbm %s180_s0, 128 }
   0x2   :  { %s15_s10 = sshll.u32 %s133_s9, 4  ;;  %p86_p0 = scmp.ne.s32.totalorder %s180_s0, %s85_s13  ;;  %s16_s10 = int_to_ptr.vmem [resolvable:$true] %s15_s10 }
   0x3   :  { %p89_p1 = scmp.lt.u32.totalorder %s85_s13, %s180_s0 }
   0x5   :  { %p91_p2 = pnand %p89_p1, %p86_p0 }
   0x7   :  { %94 = shalt.err (!%p91_p2)
}
   0x8   :  { %s95_s18 = scalar_lea.vmem %s16_s10, 128  ;;  %p100_p4 = scmp.lt.s32.totalorder %s16_s10, %s16_s10 }
   0x9   :  { %p96_p3 = scmp.ne.s32.totalorder %s16_s10, %s95_s18  ;;  %p101_p5 = scmp.lt.s32.totalorder %s95_s18, %s95_s18 }
   0xb   :  { %p102_p6 = por %p101_p5, %p100_p4 }
   0xd   :  { %p103_p7 = pnand %p102_p6, %p96_p3 }
   0xf   :  { %106 = shalt.err (!%p103_p7)
}
  0x10   :  { %18 = dma.hbm_to_vmem [thread:$0]  %s180_s0, 128, %s16_s10, [#allocation3]  }
  0x11   :  { %129 = dma.done.wait [#allocation3], 128  }
  0x12   :  { %130 = vsyncadd [#allocation3], 4294967168  ;;  %vm25_vm0 = vcmask 64512   ;;  %v24_v0 = vld [vmem:[#allocation2] sm:$0xff]  ;;  %v55_v22 = vlaneseq  ;;  %s134_s22 = smov [#allocation5]  }
  0x13   :  { %v26_v1 = vsel %vm25_vm0, %v24_v0, 0.0  ;;  %v33_v2 = vmul.f32 %v24_v0, %v24_v0  ;;  %v48_v24 = vld [vmem:[%s181_s1] sm:$0x3]  ;;  %s72_s23 = sshll.u32 %s134_s22, 4  ;;  %s73_s23 = int_to_ptr.vmem [resolvable:$true] %s72_s23 }
  0x14   :  { %v27_v3 = vrot.slane %v26_v1, 4  ;;  %v56_v23 = vshrl.u32 %v55_v22, 7  ;;  %s107_s24 = scalar_lea.vmem %s73_s23, 128  ;;  %p112_p9 = scmp.lt.s32.totalorder %s73_s23, %s73_s23 }
  0x15   :  { %v34_v4 = vsel %vm25_vm0, %v33_v2, 0.0  ;;  %p108_p8 = scmp.ne.s32.totalorder %s73_s23, %s107_s24  ;;  %p113_p10 = scmp.lt.s32.totalorder %s107_s24, %s107_s24 }
  0x16   :  { %v28_v5 = vadd.f32 %v27_v3, %v26_v1  ;;  %v35_v6 = vrot.slane %v34_v4, 4  ;;  %v57_v25 = vsub.s32 0, %v56_v23  ;;  %v62_v31 = vsub.s32 1, %v56_v23 }
  0x17   :  { %p114_p11 = por %p113_p10, %p112_p9 }
  0x18   :  { %v29_v7 = vrot.slane %v28_v5, 2  ;;  %v36_v8 = vadd.f32 %v35_v6, %v34_v4 }
  0x19   :  { %p115_p12 = pnand %p114_p11, %p108_p8 }
  0x1a   :  { %v30_v9 = vadd.f32 %v29_v7, %v28_v5  ;;  %v37_v10 = vrot.slane %v36_v8, 2 }
  0x1c   :  { %v31_v11 = vrot.slane %v30_v9, 1  ;;  %v38_v12 = vadd.f32 %v37_v10, %v36_v8 }
  0x1e   :  { %v32_v13 = vadd.f32 %v31_v11, %v30_v9  ;;  %v39_v14 = vrot.slane %v38_v12, 1 }
  0x20   :  { %v40_v15 = vadd.f32 %v39_v14, %v38_v12  ;;  %v41_v16 = vmul.f32 0.125, %v32_v13 }
  0x22   :  { %v42_v17 = vmul.f32 0.125, %v40_v15  ;;  %v43_v18 = vmul.f32 %v41_v16, %v41_v16 }
  0x24   :  { %v44_v19 = vsub.f32 %v42_v17, %v43_v18 }
  0x26   :  { %v45_v20 = vmax.f32 %v44_v19, 0.0 }
  0x28   :  { %v46_v21 = vadd.f32 1e-05, %v45_v20 }
  0x2a   :  { %83 = vrsqrt.f32 %v46_v21 }
  0x34   :  { %v84_v26 = vpop.eup %83 }
  0x35   :  { %v49_v27 = vmul.f32 %v84_v26, %v48_v24 }
  0x37   :  { %v50_v28 = vmul.f32 %v49_v27, %v41_v16  ;;  %v58_v29 = vrot.slane %v49_v27, %v57_v25 }
  0x39   :  { %v52_v30 = vrot.slane %v50_v28, 7  ;;  %v59_v33 = vmul.f32 %v58_v29, %v24_v0 }
  0x3b   :  { %v54_v32 = vsub.f32 %v48_v24, %v52_v30 }
  0x3d   :  { %v63_v34 = vrot.slane %v54_v32, %v62_v31 }
  0x3f   :  { %v64_v35 = vadd.f32 %v63_v34, %v59_v33 }
  0x41   :  { %65 = vst.msk [vmem:[#allocation5] sm:$0xff] %vm25_vm0, %v64_v35 }
  0x42   :  { %118 = shalt.err (!%p115_p12)
}
  0x43   :  { %s119_s26 = scalar_lea.hbm %s182_s2, 128 }
  0x44   :  { %p120_p13 = scmp.ne.s32.totalorder %s182_s2, %s119_s26  ;;  %p123_p0 = scmp.lt.u32.totalorder %s119_s26, %s182_s2 }
  0x46   :  { %p125_p1 = pnand %p123_p0, %p120_p13 }
  0x48   :  { %128 = shalt.err (!%p125_p1)
}
  0x49   :  { %75 = dma.vmem_to_hbm [thread:$0]  %s73_s23, 128, %s182_s2, [#allocation4]  }
  0x4a   :  { %131 = dma.done.wait [#allocation4], 128  }
  0x4b   :  { %132 = vsyncadd [#allocation4], 4294967168 }
  0x4c   :  { %79 = vsyncpa [#allocation3], 1 }
  0x4d   :  { %80 = vsyncpa [#allocation4], 1 }

</bundles_post_ra>
